<compile_context>
chip_gen: v7x
topology: tpu7x:2x2x1
jax: 0.10.0
libtpu: 0.0.40
codegen_flags: <defaults>
</compile_context>

<pallas_src>
import jax
import jax.numpy as jnp
from jax.experimental import pallas as pl
from jax.experimental.pallas import tpu as pltpu

# ---- model hyperparameters (mirror Calculator.__init__ arguments) ----------
NUM_INPUT = 4
NUM_HIDDEN = 32
NUM_OUTPUT = 4
NUM_LAYER = 3
SIGMA = 1.0
NORMALIZED = True          # use NormalizedLinear layers
NORMALIZATION = "std"
USE_BIAS = True
BATCH = 8

# ---- packed-parameter slab layout (rows x NUM_HIDDEN lanes, f32) -----------
# Row starts are multiples of 8 so in-kernel static slices align to sublanes.
W0_ROW = 0                          # rows 0:4   -> w0^T (NUM_INPUT,  NUM_HIDDEN)
W1_ROW = 8                          # rows 8:40  -> w1^T (NUM_HIDDEN, NUM_HIDDEN)
W2_ROW = 40                         # rows 40:72 -> w2^T (NUM_HIDDEN, NUM_OUTPUT), zero-padded cols
B0_ROW = 72                         # row 72     -> b0 (NUM_HIDDEN,)
B1_ROW = 73                         # row 73     -> b1 (NUM_HIDDEN,)
B2_ROW = 74                         # row 74     -> b2 (NUM_OUTPUT,), zero-padded
SLAB_ROWS = 80                      # padded to a multiple of 8


def make_params(key):
    """Deterministic parameter init (stand-in for torch.randn with seed=42)."""
    dims = []
    for i in range(NUM_LAYER):
        if i == 0:
            dims.append((NUM_INPUT, NUM_HIDDEN))
        elif i < NUM_LAYER - 1:
            dims.append((NUM_HIDDEN, NUM_HIDDEN))
        else:
            dims.append((NUM_HIDDEN, NUM_OUTPUT))
    params = []
    for (nin, nout) in dims:
        key, kw, kb = jax.random.split(key, 3)
        w = jax.random.normal(kw, (nout, nin), dtype=jnp.float32)
        b = jax.random.normal(kb, (nout,), dtype=jnp.float32)
        params.append((w, b))
    return params


def pack_params(params):
    """One-time init-side work: apply NormalizedLinear's 'std' scaling and pack
    everything into a single (SLAB_ROWS, NUM_HIDDEN) f32 slab.

    torch semantics per layer:
        weight = w / std(w) * sigma / sqrt(in)     (two-pass, unbiased std)
        bias   = (b / std(b) if out > 1 else b) * sigma
    Weights are stored TRANSPOSED to (in, out) so the kernel does plain
    (M,K)@(K,N) dots.
    """
    def scale(w, b):
        nout, nin = w.shape
        ws = (w / jnp.std(w, ddof=1)) * (SIGMA / (nin ** 0.5))
        if nout > 1:
            bs = (b / jnp.std(b, ddof=1)) * SIGMA
        else:
            bs = b * SIGMA          # torch skips the std divide for 1-elem bias
        return ws.T.astype(jnp.float32), bs.astype(jnp.float32)

    (w0, b0), (w1, b1), (w2, b2) = params
    w0t, b0s = scale(w0, b0)        # (4, 32),  (32,)
    w1t, b1s = scale(w1, b1)        # (32, 32), (32,)
    w2t, b2s = scale(w2, b2)        # (32, 4),  (4,)

    slab = jnp.zeros((SLAB_ROWS, NUM_HIDDEN), jnp.float32)
    slab = slab.at[W0_ROW:W0_ROW + NUM_INPUT, :].set(w0t)
    slab = slab.at[W1_ROW:W1_ROW + NUM_HIDDEN, :].set(w1t)
    slab = slab.at[W2_ROW:W2_ROW + NUM_HIDDEN, :NUM_OUTPUT].set(w2t)
    slab = slab.at[B0_ROW, :].set(b0s)
    slab = slab.at[B1_ROW, :].set(b1s)
    slab = slab.at[B2_ROW, :NUM_OUTPUT].set(b2s)
    return slab


def _calculator_kernel(x_ref, p_ref, o_ref):
    """3-layer MLP on pre-scaled, packed parameters."""
    h = x_ref[...]                                          # (B, NUM_INPUT)

    # layer 0: Linear(4 -> 32) + Tanh
    w0 = p_ref[W0_ROW:W0_ROW + NUM_INPUT, :]                # (4, 32)
    b0 = p_ref[B0_ROW:B0_ROW + 1, :]                        # (1, 32)
    h = jnp.tanh(jnp.dot(h, w0, preferred_element_type=jnp.float32) + b0)

    # layer 1: Linear(32 -> 32) + Tanh
    w1 = p_ref[W1_ROW:W1_ROW + NUM_HIDDEN, :]               # (32, 32)
    b1 = p_ref[B1_ROW:B1_ROW + 1, :]                        # (1, 32)
    h = jnp.tanh(jnp.dot(h, w1, preferred_element_type=jnp.float32) + b1)

    # layer 2 (last): Linear(32 -> 4), no activation.  w2/b2 are zero-padded to
    # 32 lanes, so only the first NUM_OUTPUT columns carry real data.
    w2 = p_ref[W2_ROW:W2_ROW + NUM_HIDDEN, :]               # (32, 32) padded
    b2 = p_ref[B2_ROW:B2_ROW + 1, :]                        # (1, 32)  padded
    h = jnp.dot(h, w2, preferred_element_type=jnp.float32) + b2

    o_ref[...] = h[:, :NUM_OUTPUT].astype(o_ref.dtype)


def calculator_forward(x, packed_params):
    """x: (batch, NUM_INPUT) f32.  packed_params: (SLAB_ROWS, NUM_HIDDEN) f32
    built once by pack_params() — do NOT rebuild it per call."""
    vmem = pl.BlockSpec(memory_space=pltpu.MemorySpace.VMEM)
    return pl.pallas_call(
        _calculator_kernel,
        out_shape=jax.ShapeDtypeStruct((x.shape[0], NUM_OUTPUT), jnp.float32),
        in_specs=[vmem, vmem],
        out_specs=vmem,
    )(x, packed_params)


def _reference_forward(x, params):
    """Pure-JAX reference of Calculator.forward (torch-style per-call std)."""
    h = x
    for i, (w, b) in enumerate(params):
        nout, nin = w.shape
        w_std = jnp.std(w, ddof=1)
        w = w / w_std
        if nout > 1:
            b = b / jnp.std(b, ddof=1)
        w = w * (SIGMA / (nin ** 0.5))
        b = b * SIGMA
        h = h @ w.T + b
        if i < len(params) - 1:
            h = jnp.tanh(h)
    return h


if __name__ == "__main__":
    key = jax.random.PRNGKey(0)
    kx, kp = jax.random.split(key)
    x = jax.random.normal(kx, (BATCH, NUM_INPUT), dtype=jnp.float32)
    params = make_params(kp)

    # One-time init-side normalization + packing (kept off the per-call path).
    packed = jax.block_until_ready(pack_params(params))

    out = calculator_forward(x, packed)
    out = jax.block_until_ready(out)

    ref = _reference_forward(x, params)
    assert out.shape == (BATCH, NUM_OUTPUT)
    assert jnp.allclose(out, ref, atol=1e-5, rtol=1e-5)
    print("KERNEL_OK")
</pallas_src>

<mosaic_0001>
module attributes {stable_mosaic.version = 11 : i64} {
  func.func @_calculator_kernel(%arg0: memref<8x4xf32, #tpu.memory_space<vmem>>, %arg1: memref<80x32xf32, #tpu.memory_space<vmem>>, %arg2: memref<8x4xf32, #tpu.memory_space<vmem>>) attributes {dimension_semantics = [], scalar_prefetch = 0 : i64, scratch_operands = 0 : i64, tpu.core_type = #tpu.core_type<tc>} {
    %c0 = arith.constant 0 : index
    %c0_0 = arith.constant 0 : index
    %0 = vector.load %arg0[%c0, %c0_0] : memref<8x4xf32, #tpu.memory_space<vmem>>, vector<8x4xf32>
    %c0_1 = arith.constant 0 : index
    %c0_2 = arith.constant 0 : index
    %1 = vector.load %arg1[%c0_1, %c0_2] : memref<80x32xf32, #tpu.memory_space<vmem>>, vector<4x32xf32>
    %c72 = arith.constant 72 : index
    %c0_3 = arith.constant 0 : index
    %2 = vector.load %arg1[%c72, %c0_3] : memref<80x32xf32, #tpu.memory_space<vmem>>, vector<1x32xf32>
    %cst = arith.constant dense<0.000000e+00> : vector<8x32xf32>
    %3 = tpu.matmul %0, %1, %cst {dimension_numbers = #tpu.dot_dimension_numbers<[1], [0], [0], [1], [0, 0, 1, 1], [], []>} : vector<8x4xf32>, vector<4x32xf32>, vector<8x32xf32> -> vector<8x32xf32>
    %4 = vector.broadcast %2 : vector<1x32xf32> to vector<8x32xf32>
    %5 = arith.addf %3, %4 : vector<8x32xf32>
    %6 = math.tanh %5 : vector<8x32xf32>
    %c8 = arith.constant 8 : index
    %c0_4 = arith.constant 0 : index
    %7 = vector.load %arg1[%c8, %c0_4] : memref<80x32xf32, #tpu.memory_space<vmem>>, vector<32x32xf32>
    %c73 = arith.constant 73 : index
    %c0_5 = arith.constant 0 : index
    %8 = vector.load %arg1[%c73, %c0_5] : memref<80x32xf32, #tpu.memory_space<vmem>>, vector<1x32xf32>
    %cst_6 = arith.constant dense<0.000000e+00> : vector<8x32xf32>
    %9 = tpu.matmul %6, %7, %cst_6 {dimension_numbers = #tpu.dot_dimension_numbers<[1], [0], [0], [1], [0, 0, 1, 1], [], []>} : vector<8x32xf32>, vector<32x32xf32>, vector<8x32xf32> -> vector<8x32xf32>
    %10 = vector.broadcast %8 : vector<1x32xf32> to vector<8x32xf32>
    %11 = arith.addf %9, %10 : vector<8x32xf32>
    %12 = math.tanh %11 : vector<8x32xf32>
    %c40 = arith.constant 40 : index
    %c0_7 = arith.constant 0 : index
    %13 = vector.load %arg1[%c40, %c0_7] : memref<80x32xf32, #tpu.memory_space<vmem>>, vector<32x32xf32>
    %c74 = arith.constant 74 : index
    %c0_8 = arith.constant 0 : index
    %14 = vector.load %arg1[%c74, %c0_8] : memref<80x32xf32, #tpu.memory_space<vmem>>, vector<1x32xf32>
    %cst_9 = arith.constant dense<0.000000e+00> : vector<8x32xf32>
    %15 = tpu.matmul %12, %13, %cst_9 {dimension_numbers = #tpu.dot_dimension_numbers<[1], [0], [0], [1], [0, 0, 1, 1], [], []>} : vector<8x32xf32>, vector<32x32xf32>, vector<8x32xf32> -> vector<8x32xf32>
    %16 = vector.broadcast %14 : vector<1x32xf32> to vector<8x32xf32>
    %17 = arith.addf %15, %16 : vector<8x32xf32>
    %18 = vector.extract_strided_slice %17 {offsets = [0, 0], sizes = [8, 4], strides = [1, 1]} : vector<8x32xf32> to vector<8x4xf32>
    %c0_10 = arith.constant 0 : index
    %c0_11 = arith.constant 0 : index
    %19 = vector.load %arg2[%c0_10, %c0_11] : memref<8x4xf32, #tpu.memory_space<vmem>>, vector<8x4xf32>
    tpu.vector_store %arg2[%c0_10, %c0_11], %18 {strides = array<i32>} : memref<8x4xf32, #tpu.memory_space<vmem>>, vector<8x4xf32>,
    return
  }
}

</mosaic_0001>

<bundles_post_ra>
// kernel: tpu_custom_call.1
= control target key start
LH: loop header
LB: loop body
LE: loop exit
PB: predicated region body
PF: predicated region fallthrough
CT: control target
= control target key end

     0   :  { %vm22_vm0 = vcmask 1043456   ;;  %vm18_vm1 = vcmask 31744   ;;  %v333_v0 = vmov 0.0   ;;  %vm334_vm2 = vmmov 0   ;;  %s397_s1 = inlined_call_operand.vmem [shape: f32[80,32], index: 1, kind: input, shape index: {}]   ;;  %s398_s0 = inlined_call_operand.vmem [shape: f32[8,4], index: 0, kind: input, shape index: {}]   ;;  %s399_s2 = inlined_call_operand.vmem [shape: f32[8,4], index: 2, kind: output, shape index: {}]  }
   0x1   :  { %287 = vmatprep.subr.mxu0 %v333_v0  ;;  %v12_v1 = vld [vmem:[%s397_s1] sm:$0xf]  ;;  %289 = vmatprep.mubr.msk.f32.mxu0 %vm334_vm2, %v333_v0  ;;  %v97_v3 = vld [vmem:[%s397_s1 + $0x8] sm:$0xff]  ;;  %v98_v4 = vld [vmem:[%s397_s1 + $0x10] sm:$0xff]  ;;  %v335_v6 = vmov 0.0|0.0   ;;  %vm106_vm3 = vcmask 261120  }
   0x2   :  { %v11_v2 = vld [vmem:[%s398_s0] sm:$0xff]  ;;  %288 = vmatpush3.msk.msra.mxu0 %vm22_vm0, %v12_v1  ;;  %300 = vmatprep.mubr.msk.f32.mxu1 %vm334_vm2, %v333_v0  ;;  %v99_v5 = vld [vmem:[%s397_s1 + $0x18] sm:$0xff]  ;;  %v315_v7 = vpack.c.bf16 %v98_v4, %v97_v3  ;;  %v268_v10 = vld [vmem:[%s397_s1 + $0x48] ss:$0 sm:$0xff] }
   0x3   :  { %290 = vmatmul.mubr.msk.f32.vlgmr.msra.gmra.mrb[0].mxu0 %vm18_vm1, %v11_v2  ;;  %314 = vmatprep.subr.bf16.mxu1 %v335_v6  ;;  %v100_v8 = vld [vmem:[%s397_s1 + $0x20] sm:$0xff]  ;;  %v181_v15 = vld [vmem:[%s397_s1 + $0x28] sm:$0xff]  ;;  %v182_v16 = vld [vmem:[%s397_s1 + $0x30] sm:$0xff] }
   0x4   :  { %311 = vmatprep.mubr.msk.f32.mxu0 %vm334_vm2, %v333_v0  ;;  %320 = vmatprep.subr.bf16.mxu0 %v335_v6  ;;  %v318_v9 = vpack.c.bf16 %v100_v8, %v99_v5  ;;  %v183_v17 = vld [vmem:[%s397_s1 + $0x38] sm:$0xff]  ;;  %v321_v18 = vpack.c.bf16 %v182_v16, %v181_v15  ;;  %v184_v19 = vld [vmem:[%s397_s1 + $0x40] sm:$0xff]  ;;  %v271_v21 = vld [vmem:[%s397_s1 + $0x49] ss:$0 sm:$0xff] }
   0x5   :  { %316 = vmatpush3.bf16.msra.mxu1 %v315_v7  ;;  %v324_v20 = vpack.c.bf16 %v184_v19, %v183_v17  ;;  %v273_v26 = vld [vmem:[%s397_s1 + $0x4a] ss:$0 sm:$0xff] }
   0x6   :  { %317 = vmatprep.subr.bf16.mxu1 %v335_v6  ;;  %322 = vmatpush3.bf16.msra.mxu0 %v321_v18 }
   0x7   :  { %323 = vmatprep.subr.bf16.mxu0 %v335_v6 }
   0x9   :  { %319 = vmatpush3.bf16.msra.mxu1 %v318_v9 }
   0xa   :  { %325 = vmatpush3.bf16.msra.mxu0 %v324_v20 }
  0xd6   :  { %v92_v11 = vpop.f32.mrb[0].mxu0 }
  0xd7   :  { %v93_v12 = vadd.f32 %v268_v10, %v92_v11  ;;  %v291_v13 = vpop.f32.mrb[1].mxu0 }
  0xd9   :  { %329 = vtanh.f32 %v93_v12 }
  0xe3   :  { %v330_v14 = vpop.eup %329 }
  0xe4   :  { %301 = vmatmul.mubr.msk.f32.vlgmr.msra.gmra.mrb[0].mxu1 %vm106_vm3, %v330_v14 }
 0x1b7   :  { %v176_v22 = vpop.f32.mrb[0].mxu1 }
 0x1b8   :  { %v177_v23 = vadd.f32 %v271_v21, %v176_v22  ;;  %v302_v24 = vpop.f32.mrb[1].mxu1 }
 0x1ba   :  { %331 = vtanh.f32 %v177_v23 }
 0x1c4   :  { %v332_v25 = vpop.eup %331 }
 0x1c5   :  { %312 = vmatmul.mubr.msk.f32.vlgmr.msra.gmra.mrb[2].mxu0 %vm106_vm3, %v332_v25 }
 0x298   :  { %v259_v27 = vpop.f32.mrb[2].mxu0 }
 0x299   :  { %v260_v28 = vadd.f32 %v273_v26, %v259_v27  ;;  %v313_v29 = vpop.f32.mrb[3].mxu0 }
 0x29b   :  { %263 = vst.msk [vmem:[%s399_s2] sm:$0xff] %vm18_vm1, %v260_v28 }

</bundles_post_ra>
